<compile_context>
chip_gen: v5e
topology: v5e:2x2
jax: 0.10.0
libtpu: 0.0.40
codegen_flags: <defaults>
</compile_context>

<pallas_src>
import functools

import jax
import jax.numpy as jnp
from jax import lax
from jax.experimental import pallas as pl
from jax.experimental.pallas import tpu as pltpu

# ------------------------- small-scale configuration -------------------------
NPOINTS = 16              # original: 1024
POINT_ALL = 24            # original: 1200
MAX_BATCH_POINTS = 140000
GRID_SIZE = 0.04
SIGMA = 1.0
MAX_NUM_NEIGHBORS = 8     # original: 34 (scaled down for the small synthetic example)
CDIM = 32                 # transformer channel width of the stand-in model
HEADS = 4


def _default_vmem_limit():
    """Per-generation scoped-VMEM budget: ~half of physical VMEM, capped."""
    try:
        return min(96 * 1024 * 1024,
                   int(pltpu.get_tpu_info().vmem_capacity_bytes) // 2)
    except Exception:                      # conservative fallback (safe on v7x too)
        return 32 * 1024 * 1024


_VMEM_LIMIT = _default_vmem_limit()


def _cparams(*sem):
    return pltpu.CompilerParams(dimension_semantics=sem,
                                vmem_limit_bytes=_VMEM_LIMIT)


def _row_tile(n, target):
    """Largest multiple-of-8 row tile <= target that divides n (falls back to n)."""
    if n <= target:
        return n
    for t in range(target, 7, -8):
        if n % t == 0:
            return t
    return n


# =============================== Pallas kernels ===============================


def _fps_kernel(xyz_t_ref, xyz_r_ref, idx_ref):
    """Furthest point sampling.  xyz_t_ref: (1, 3, N); xyz_r_ref: (N, 3)."""
    n_points = xyz_t_ref.shape[2]
    n_samples = idx_ref.shape[2]
    idx_bits = max(int(n_points - 1).bit_length(), 1)
    idx_mask = (1 << idx_bits) - 1

    xyz = xyz_t_ref[0]                                              # (3, N)
    x0, x1, x2 = xyz[0:1, :], xyz[1:2, :], xyz[2:3, :]
    iota_n = lax.broadcasted_iota(jnp.int32, (1, n_points), 1)
    iota_s = lax.broadcasted_iota(jnp.int32, (1, n_samples), 1)
    rev_idx = (n_points - 1) - iota_n                               # ties -> lowest idx
    idx_ref[0] = jnp.zeros((1, n_samples), jnp.int32)

    def body(s, carry):
        far, dist = carry
        # record current farthest index (lane-dense one-hot accumulate; no reduce)
        idx_ref[0] = idx_ref[0] + jnp.where(iota_s == s, far, 0)
        # centroid via a dynamic sublane slice of the row-major copy (no one-hot sum)
        crow = xyz_r_ref[pl.ds(far, 1), :]                          # (1, 3)
        d = ((x0 - crow[:, 0:1]) ** 2 + (x1 - crow[:, 1:2]) ** 2
             + (x2 - crow[:, 2:3]) ** 2)                            # (1, N), >= 0
        dist = jnp.minimum(dist, d)
        # fused argmax: pack reversed index into the low mantissa bits and do a
        # single cross-lane max (distances are non-negative -> int order == float).
        key = jnp.bitwise_or(
            jnp.bitwise_and(pltpu.bitcast(dist, jnp.int32), jnp.int32(~idx_mask)),
            rev_idx)
        best = jnp.max(key)
        new_far = jnp.int32(n_points - 1) - jnp.bitwise_and(best, jnp.int32(idx_mask))
        return new_far, dist

    lax.fori_loop(0, n_samples, body,
                  (jnp.int32(0), jnp.full((1, n_points), 1e10, jnp.float32)))


def furthest_point_sample(xyz, n_samples):
    """xyz: (B, N, 3) float32 -> (B, n_samples) int32."""
    b, n, _ = xyz.shape
    xyz_t = jnp.transpose(xyz, (0, 2, 1))                           # (B, 3, N)
    out = pl.pallas_call(
        _fps_kernel,
        out_shape=jax.ShapeDtypeStruct((b, 1, n_samples), jnp.int32),
        grid=(b,),
        in_specs=[pl.BlockSpec((1, 3, n), lambda i: (i, 0, 0)),
                  pl.BlockSpec((None, n, 3), lambda i: (i, 0, 0))],
        out_specs=pl.BlockSpec((1, 1, n_samples), lambda i: (i, 0, 0)),
        compiler_params=_cparams("parallel"),
    )(xyz_t, xyz)
    return out[:, 0, :]


def _ball_query_kernel(xyz_ref, xyz_t_ref, bcol_ref, brow_ref, tri_ref, red_ref,
                       out_ref, *, radius_sq):
    """Radius neighbor search ('partial_dense'), one row strip per grid step."""
    k_max = out_ref.shape[1]
    xyz = xyz_ref[...]                                              # (TR, 3)
    xyz_t = xyz_t_ref[...]                                          # (3, N)
    # squared distances on the VPU (no K=3 MXU matmul)
    d2 = ((xyz[:, 0:1] - xyz_t[0:1, :]) ** 2
          + (xyz[:, 1:2] - xyz_t[1:2, :]) ** 2
          + (xyz[:, 2:3] - xyz_t[2:3, :]) ** 2)                     # (TR, N)
    valid = jnp.logical_and(d2 <= radius_sq, bcol_ref[...] == brow_ref[...])
    # rank[i, j] = # valid neighbors of i among indices <= j.  `tri` is the
    # PRECOMPUTED (N, N) bf16 triangular matrix (resident; not rebuilt per step).
    rank = jnp.dot(valid.astype(jnp.bfloat16), tri_ref[...],
                   preferred_element_type=jnp.float32)              # exact ints
    red = red_ref[...]                                              # (N, 3) [j_hi, j_lo, 1]
    cols = []
    for kk in range(k_max):
        hit = jnp.logical_and(valid, rank == (kk + 1)).astype(jnp.bfloat16)
        # one MXU matmul replaces two cross-lane reductions per k
        r = jnp.dot(hit, red, preferred_element_type=jnp.float32)   # (TR, 3)
        idx = r[:, 0:1] * 256.0 + r[:, 1:2]
        has = r[:, 2:3]
        cols.append(jnp.where(has > 0.5, idx, -1.0))
    out_ref[...] = jnp.concatenate(cols, axis=1).astype(jnp.int32)


def ball_query(coord, batch, radius, k_max):
    """coord: (N, 3), batch: (N,) int32 -> (N, k_max) int32 (padded with -1)."""
    n = coord.shape[0]
    bf = batch.astype(jnp.float32)
    tr = _row_tile(n, 256)
    # Precompute the prefix-count matrix and the index-recovery matrix ONCE.
    r_full = lax.broadcasted_iota(jnp.int32, (n, n), 0)
    c_full = lax.broadcasted_iota(jnp.int32, (n, n), 1)
    tri = (r_full <= c_full).astype(jnp.bfloat16)                   # (N, N)
    j = jnp.arange(n, dtype=jnp.int32)
    red = jnp.stack([(j // 256).astype(jnp.bfloat16),               # bf16-exact pieces
                     (j % 256).astype(jnp.bfloat16),
                     jnp.ones((n,), jnp.bfloat16)], axis=1)         # (N, 3)
    # TODO(synk): for production N, tile the column dimension with a second
    # "arbitrary" grid axis and accumulate prefix counts in VMEM scratch so the
    # resident tri / (tr, N) intermediates stay within v7x's 64 MiB VMEM.
    return pl.pallas_call(
        functools.partial(_ball_query_kernel,
                          radius_sq=float(radius) * float(radius)),
        out_shape=jax.ShapeDtypeStruct((n, k_max), jnp.int32),
        grid=(n // tr,),
        in_specs=[
            pl.BlockSpec((tr, 3), lambda i: (i, 0)),
            pl.BlockSpec((3, n), lambda i: (0, 0)),
            pl.BlockSpec((tr, 1), lambda i: (i, 0)),
            pl.BlockSpec((1, n), lambda i: (0, 0)),
            pl.BlockSpec((n, n), lambda i: (0, 0)),   # resident after first fetch
            pl.BlockSpec((n, 3), lambda i: (0, 0)),
        ],
        out_specs=pl.BlockSpec((tr, k_max), lambda i: (i, 0)),
        compiler_params=_cparams("parallel"),
    )(coord, coord.T, bf[:, None], bf[None, :], tri, red)


def _linear_kernel(x_ref, w_ref, b_ref, o_ref, *, activation):
    y = jnp.dot(x_ref[...], w_ref[...],
                preferred_element_type=jnp.float32) + b_ref[...]
    if activation == "relu":
        y = jnp.maximum(y, 0.0)
    elif activation == "gelu":
        y = jax.nn.gelu(y)
    o_ref[...] = y.astype(o_ref.dtype)


def linear(x, w, b, activation="none", out_dtype=jnp.float32):
    """Row-tiled fused matmul + bias (+ activation); bf16 MXU, f32 accumulation."""
    m, c_in = x.shape
    n_out = w.shape[1]
    tr = _row_tile(m, 512)
    return pl.pallas_call(
        functools.partial(_linear_kernel, activation=activation),
        out_shape=jax.ShapeDtypeStruct((m, n_out), out_dtype),
        grid=(m // tr,),
        in_specs=[
            pl.BlockSpec((tr, c_in), lambda i: (i, 0)),
            pl.BlockSpec(w.shape, lambda i: (0, 0)),
            pl.BlockSpec(b.shape, lambda i: (0, 0)),
        ],
        out_specs=pl.BlockSpec((tr, n_out), lambda i: (i, 0)),
        compiler_params=_cparams("parallel"),
    )(x, w, b)


def _pool_embed_kernel(idx_ref, x_ref, w_ref, b_ref, o_ref):
    """In-kernel neighbor gather (one-hot MXU matmul) + max-pool + linear + ReLU."""
    n = x_ref.shape[0]
    k_max = idx_ref.shape[1]
    idx = idx_ref[...]                                              # (TR, K) int32
    x_all = x_ref[...]                                              # (N, C) bf16, resident
    tr = idx.shape[0]
    col = lax.broadcasted_iota(jnp.int32, (tr, n), 1)
    pooled = jnp.full((tr, x_all.shape[1]), -1e9, jnp.float32)
    for kk in range(k_max):
        idx_k = idx[:, kk:kk + 1]                                   # (TR, 1)
        sel = (col == idx_k).astype(jnp.bfloat16)                   # one-hot (idx=-1 -> 0s)
        g = jnp.dot(sel, x_all, preferred_element_type=jnp.float32)  # exact row gather
        g = jnp.where(idx_k >= 0, g, -1e9)
        pooled = jnp.maximum(pooled, g)
    y = jnp.dot(pooled.astype(jnp.bfloat16), w_ref[...],
                preferred_element_type=jnp.float32) + b_ref[...]
    o_ref[...] = jnp.maximum(y, 0.0)


def pool_embed(x_full, neighbor_idx, w, b):
    """x_full: (N, C) bf16, neighbor_idx: (N, K) int32 -> (N, C_out) f32."""
    n, c = x_full.shape
    k = neighbor_idx.shape[1]
    c_out = w.shape[1]
    tr = _row_tile(n, 256)
    return pl.pallas_call(
        _pool_embed_kernel,
        out_shape=jax.ShapeDtypeStruct((n, c_out), jnp.float32),
        grid=(n // tr,),
        in_specs=[
            pl.BlockSpec((tr, k), lambda i: (i, 0)),
            pl.BlockSpec((n, c), lambda i: (0, 0)),    # resident full embedding
            pl.BlockSpec(w.shape, lambda i: (0, 0)),
            pl.BlockSpec(b.shape, lambda i: (0, 0)),
        ],
        out_specs=pl.BlockSpec((tr, c_out), lambda i: (i, 0)),
        compiler_params=_cparams("parallel"),
    )(neighbor_idx, x_full, w, b)


def _ln_qkv_kernel(x_ref, g_ref, b_ref, wq_ref, wk_ref, wv_ref,
                   bq_ref, bk_ref, bv_ref, q_ref, k_ref, v_ref):
    """LayerNorm fused with the q/k/v projections (q weight pre-scaled)."""
    x = x_ref[...]
    mu = jnp.mean(x, axis=-1, keepdims=True)
    var = jnp.mean((x - mu) ** 2, axis=-1, keepdims=True)
    h = ((x - mu) * lax.rsqrt(var + 1e-5) * g_ref[...] + b_ref[...]
         ).astype(jnp.bfloat16)
    q_ref[...] = (jnp.dot(h, wq_ref[...], preferred_element_type=jnp.float32)
                  + bq_ref[...]).astype(jnp.bfloat16)
    k_ref[...] = (jnp.dot(h, wk_ref[...], preferred_element_type=jnp.float32)
                  + bk_ref[...]).astype(jnp.bfloat16)
    v_ref[...] = (jnp.dot(h, wv_ref[...], preferred_element_type=jnp.float32)
                  + bv_ref[...]).astype(jnp.bfloat16)


def ln_qkv(x, gamma, beta, wq, wk, wv, bq, bk, bv):
    n, c = x.shape
    c_out = wq.shape[1]
    tr = _row_tile(n, 512)
    full = lambda a: pl.BlockSpec(a.shape, lambda i: (0, 0))
    return pl.pallas_call(
        _ln_qkv_kernel,
        out_shape=tuple(jax.ShapeDtypeStruct((n, c_out), jnp.bfloat16)
                        for _ in range(3)),
        grid=(n // tr,),
        in_specs=[pl.BlockSpec((tr, c), lambda i: (i, 0)),
                  full(gamma), full(beta), full(wq), full(wk), full(wv),
                  full(bq), full(bk), full(bv)],
        out_specs=tuple(pl.BlockSpec((tr, c_out), lambda i: (i, 0))
                        for _ in range(3)),
        compiler_params=_cparams("parallel"),
    )(x, gamma, beta, wq, wk, wv, bq, bk, bv)


def _attention_kernel(qlo_ref, qhi_ref, klo_ref, khi_ref,
                      q_ref, k_ref, v_ref, bq_ref, bk_ref, x_ref, wp_ref, bp_ref,
                      o_ref, m_sc, l_sc, acc_sc, *, heads):
    """Flash-style batch-masked MHA in (N, C) layout, heads split in-kernel.

    Cross-cloud kv tiles are skipped via scalar-prefetched per-tile batch ranges,
    and the output projection + residual is fused into the epilogue.
    """
    qi = pl.program_id(0)
    ki = pl.program_id(1)
    c = q_ref.shape[1]
    dh = c // heads

    @pl.when(ki == 0)
    def _():
        m_sc[...] = jnp.full_like(m_sc, -jnp.inf)
        l_sc[...] = jnp.zeros_like(l_sc)
        acc_sc[...] = jnp.zeros_like(acc_sc)

    overlap = jnp.logical_and(klo_ref[ki] <= qhi_ref[qi],
                              khi_ref[ki] >= qlo_ref[qi])

    @pl.when(overlap)
    def _():
        mask = bq_ref[...] == bk_ref[...]                           # (TQ, TKV)
        qv = q_ref[...]                                             # (TQ, C) bf16, pre-scaled
        kv = k_ref[...]                                             # (TKV, C) bf16
        vv = v_ref[...]                                             # (TKV, C) bf16
        # NOTE: Dh=8 contraction heavily under-uses the MXU; kept on the MXU for
        # robustness -- the big wins here are the layout, tile skip, and fusion.
        for h in range(heads):
            sl = slice(h * dh, (h + 1) * dh)
            s = jnp.einsum("qd,kd->qk", qv[:, sl], kv[:, sl],
                           preferred_element_type=jnp.float32)      # (TQ, TKV)
            s = jnp.where(mask, s, -1e9)
            m_prev = m_sc[:, h:h + 1]
            m_new = jnp.maximum(m_prev, jnp.max(s, axis=-1, keepdims=True))
            alpha = jnp.exp(m_prev - m_new)
            p = jnp.exp(s - m_new)
            l_sc[:, h:h + 1] = alpha * l_sc[:, h:h + 1] + jnp.sum(
                p, axis=-1, keepdims=True)
            acc_sc[:, sl] = alpha * acc_sc[:, sl] + jnp.dot(
                p.astype(jnp.bfloat16), vv[:, sl],
                preferred_element_type=jnp.float32)
            m_sc[:, h:h + 1] = m_new

    @pl.when(ki == pl.num_programs(1) - 1)
    def _():
        pieces = []
        for h in range(heads):
            sl = slice(h * dh, (h + 1) * dh)
            inv = pl.reciprocal(l_sc[:, h:h + 1], approx=True)
            pieces.append(acc_sc[:, sl] * inv)
        attn = jnp.concatenate(pieces, axis=1).astype(jnp.bfloat16)  # (TQ, C)
        y = jnp.dot(attn, wp_ref[...],
                    preferred_element_type=jnp.float32) + bp_ref[...]
        o_ref[...] = x_ref[...] + y                                  # fused proj+residual


def attention_proj_residual(q, k, v, x, batch, wproj, bproj):
    """q, k, v: (N, C) bf16 (q pre-scaled); x: (N, C) f32 residual -> (N, C) f32."""
    n, c = x.shape
    tq = _row_tile(n, 256)
    tkv = _row_tile(n, 512)
    nq, nk = n // tq, n // tkv
    b32 = batch.astype(jnp.int32)
    qlo = jnp.min(b32.reshape(nq, tq), axis=1)
    qhi = jnp.max(b32.reshape(nq, tq), axis=1)
    klo = jnp.min(b32.reshape(nk, tkv), axis=1)
    khi = jnp.max(b32.reshape(nk, tkv), axis=1)
    bcol = batch.astype(jnp.float32)[:, None]                        # (N, 1)
    brow = batch.astype(jnp.float32)[None, :]                        # (1, N)

    grid_spec = pltpu.PrefetchScalarGridSpec(
        num_scalar_prefetch=4,
        grid=(nq, nk),
        in_specs=[
            pl.BlockSpec((tq, c), lambda qi, ki, *_: (qi, 0)),       # q
            pl.BlockSpec((tkv, c), lambda qi, ki, *_: (ki, 0)),      # k
            pl.BlockSpec((tkv, c), lambda qi, ki, *_: (ki, 0)),      # v
            pl.BlockSpec((tq, 1), lambda qi, ki, *_: (qi, 0)),       # batch of q rows
            pl.BlockSpec((1, tkv), lambda qi, ki, *_: (0, ki)),      # batch of kv cols
            pl.BlockSpec((tq, c), lambda qi, ki, *_: (qi, 0)),       # residual x
            pl.BlockSpec(wproj.shape, lambda qi, ki, *_: (0, 0)),
            pl.BlockSpec(bproj.shape, lambda qi, ki, *_: (0, 0)),
        ],
        out_specs=pl.BlockSpec((tq, c), lambda qi, ki, *_: (qi, 0)),
        scratch_shapes=[
            pltpu.VMEM((tq, HEADS), jnp.float32),
            pltpu.VMEM((tq, HEADS), jnp.float32),
            pltpu.VMEM((tq, c), jnp.float32),
        ])
    return pl.pallas_call(
        functools.partial(_attention_kernel, heads=HEADS),
        out_shape=jax.ShapeDtypeStruct((n, c), jnp.float32),
        grid_spec=grid_spec,
        compiler_params=_cparams("parallel", "arbitrary"),
    )(qlo, qhi, klo, khi, q, k, v, bcol, brow, x, wproj, bproj)


def _mlp_block_kernel(x_ref, g2_ref, be2_ref, w1_ref, b1_ref, w2_ref, b2_ref,
                      go_ref, bo_ref, o_ref):
    """LN2 + MLP(gelu) + residual + output LayerNorm, fully fused."""
    x = x_ref[...]
    mu = jnp.mean(x, axis=-1, keepdims=True)
    var = jnp.mean((x - mu) ** 2, axis=-1, keepdims=True)
    h = ((x - mu) * lax.rsqrt(var + 1e-5) * g2_ref[...] + be2_ref[...]
         ).astype(jnp.bfloat16)
    m = jnp.dot(h, w1_ref[...], preferred_element_type=jnp.float32) + b1_ref[...]
    m = jax.nn.gelu(m).astype(jnp.bfloat16)
    y = x + jnp.dot(m, w2_ref[...], preferred_element_type=jnp.float32) + b2_ref[...]
    mu2 = jnp.mean(y, axis=-1, keepdims=True)
    var2 = jnp.mean((y - mu2) ** 2, axis=-1, keepdims=True)
    o_ref[...] = (y - mu2) * lax.rsqrt(var2 + 1e-5) * go_ref[...] + bo_ref[...]


def mlp_block(x, g2, be2, w1, b1, w2, b2, go, bo):
    n, c = x.shape
    tr = _row_tile(n, 512)
    full = lambda a: pl.BlockSpec(a.shape, lambda i: (0, 0))
    return pl.pallas_call(
        _mlp_block_kernel,
        out_shape=jax.ShapeDtypeStruct((n, c), jnp.float32),
        grid=(n // tr,),
        in_specs=[pl.BlockSpec((tr, c), lambda i: (i, 0)),
                  full(g2), full(be2), full(w1), full(b1),
                  full(w2), full(b2), full(go), full(bo)],
        out_specs=pl.BlockSpec((tr, c), lambda i: (i, 0)),
        compiler_params=_cparams("parallel"),
    )(x, g2, be2, w1, b1, w2, b2, go, bo)


# ======================= stand-in stratified transformer ======================


def make_params(key, c_in=6, c=CDIM):
    keys = jax.random.split(key, 6)

    def lin(k, din, dout):
        # weights are stored in bf16 once (MXU operand / DMA payload format);
        # biases and LN parameters stay f32.
        return {"w": (jax.random.normal(k, (din, dout), jnp.float32) * 0.05
                      ).astype(jnp.bfloat16),
                "b": jnp.zeros((1, dout), jnp.float32)}

    return {
        "embed1": lin(keys[0], c_in, c),
        "embed2": lin(keys[1], c, c),
        "qkv":    lin(keys[2], c, 3 * c),
        "proj":   lin(keys[3], c, c),
        "mlp1":   lin(keys[4], c, 2 * c),
        "mlp2":   lin(keys[5], 2 * c, c),
        "ln1_g": jnp.ones((1, c), jnp.float32), "ln1_b": jnp.zeros((1, c), jnp.float32),
        "ln2_g": jnp.ones((1, c), jnp.float32), "ln2_b": jnp.zeros((1, c), jnp.float32),
        "lno_g": jnp.ones((1, c), jnp.float32), "lno_b": jnp.zeros((1, c), jnp.float32),
    }


def stratified_transformer(params, feat, coord, offset, batch, neighbor_idx):
    """feat: (N, 6), coord: (N, 3), batch: (N,), neighbor_idx: (N, K) -> (N, C)."""
    del coord, offset  # stand-in uses batch + neighbor_idx for locality
    c = params["embed1"]["w"].shape[1]
    dh = c // HEADS

    # point embedding (fused matmul + bias + relu); bf16 output feeds the
    # in-kernel one-hot gather of pool_embed (no (N, K, C) HBM materialization).
    x_e = linear(feat.astype(jnp.bfloat16), params["embed1"]["w"],
                 params["embed1"]["b"], "relu", out_dtype=jnp.bfloat16)
    x = pool_embed(x_e, neighbor_idx, params["embed2"]["w"], params["embed2"]["b"])

    # split the qkv weight and fold the 1/sqrt(dh) softmax scale into Q (free).
    scale = 1.0 / (dh ** 0.5)
    wqkv, bqkv = params["qkv"]["w"], params["qkv"]["b"]
    wq, wk, wv = wqkv[:, :c] * scale, wqkv[:, c:2 * c], wqkv[:, 2 * c:]
    bq, bk, bv = bqkv[:, :c] * scale, bqkv[:, c:2 * c], bqkv[:, 2 * c:]

    # LN1 + QKV projections (lane-dense (N, C) bf16 outputs, no head transpose).
    q, k, v = ln_qkv(x, params["ln1_g"], params["ln1_b"], wq, wk, wv, bq, bk, bv)

    # flash attention with in-kernel batch masking, kv-tile skip, and fused
    # proj + residual epilogue.
    x = attention_proj_residual(q, k, v, x, batch,
                                params["proj"]["w"], params["proj"]["b"])

    # fused LN2 + MLP(gelu) + residual + output LayerNorm
    return mlp_block(x, params["ln2_g"], params["ln2_b"],
                     params["mlp1"]["w"], params["mlp1"]["b"],
                     params["mlp2"]["w"], params["mlp2"]["b"],
                     params["lno_g"], params["lno_b"])


# ============================== backbone forward ==============================


def backbone_forward(points, end_points, params, subsample_key):
    if end_points is None:
        raise ValueError("end_points is needed")
    del points  # unused by the original forward as well
    point_clouds = end_points["point_clouds"]                        # (B, N, 3)
    cloud_colors = end_points["cloud_colors"]                        # (B, N, 3)
    coord_clouds = end_points["coord_clouds"]                        # (B, N, 3)
    b = point_clouds.shape[0]

    end_points["input_xyz"] = point_clouds

    fps_idx = furthest_point_sample(point_clouds, POINT_ALL)         # (B, POINT_ALL)
    # original: fps_idx[:, np.random.choice(point_all, npoints, False)]
    choice = jax.random.permutation(subsample_key, POINT_ALL)[:NPOINTS]
    fps_idx = fps_idx[:, choice]                                     # (B, NPOINTS)

    gather = lambda pc: jnp.take_along_axis(pc, fps_idx[..., None], axis=1)
    point_clouds = gather(point_clouds)
    cloud_colors = gather(cloud_colors) / 255.0
    coord_clouds = gather(coord_clouds)

    # offset bookkeeping (all clouds kept; NPOINTS << MAX_BATCH_POINTS)
    k_keep, count, offset = 0, 0, []
    for _ in range(b):
        count += NPOINTS
        if count > MAX_BATCH_POINTS:
            break
        k_keep += 1
        offset.append(count)
    offset = jnp.array(offset, jnp.int32)
    coord = coord_clouds[:k_keep].reshape(-1, 3)
    feat = cloud_colors[:k_keep].reshape(-1, 3)
    batch = jnp.repeat(jnp.arange(k_keep, dtype=jnp.int32), NPOINTS)

    radius = 2.5 * GRID_SIZE * SIGMA
    neighbor_idx = ball_query(coord, batch, radius, MAX_NUM_NEIGHBORS)

    feat = jnp.concatenate([coord, feat], axis=1)                    # (N_total, 6)
    output = stratified_transformer(params, feat, coord, offset, batch, neighbor_idx)

    # stack per-cloud segments and permute to (B, C, NPOINTS)
    features = output.reshape(k_keep, NPOINTS, -1).transpose(0, 2, 1)

    end_points["fp2_xyz"] = point_clouds
    end_points["fp2_inds"] = fps_idx
    return features, point_clouds, end_points


# ==================================== main ====================================

if __name__ == "__main__":
    key = jax.random.PRNGKey(0)
    k_pts, k_col, k_param, k_sub = jax.random.split(key, 4)

    B, N_RAW = 2, 64
    point_clouds = jax.random.uniform(k_pts, (B, N_RAW, 3), jnp.float32) * 0.3
    cloud_colors = jax.random.uniform(k_col, (B, N_RAW, 3), jnp.float32) * 255.0
    coord_clouds = point_clouds

    end_points = {
        "point_clouds": point_clouds,
        "cloud_colors": cloud_colors,
        "coord_clouds": coord_clouds,
    }
    params = make_params(k_param)

    features, fps_xyz, end_points = backbone_forward(point_clouds, end_points,
                                                     params, k_sub)
    jax.block_until_ready((features, fps_xyz))

    assert features.shape == (B, CDIM, NPOINTS), features.shape
    assert fps_xyz.shape == (B, NPOINTS, 3), fps_xyz.shape
    assert end_points["fp2_inds"].shape == (B, NPOINTS)
    print("KERNEL_OK")
</pallas_src>

<mosaic_0001>
module attributes {stable_mosaic.version = 11 : i64} {
  func.func @_fps_kernel(%arg0: i32, %arg1: memref<1x3x64xf32, #tpu.memory_space<vmem>>, %arg2: memref<1x64x3xf32, #tpu.memory_space<vmem>>, %arg3: memref<1x1x24xi32, #tpu.memory_space<vmem>>) attributes {dimension_semantics = [#tpu.dimension_semantics<parallel>], iteration_bounds = array<i64: 2>, scalar_prefetch = 0 : i64, scratch_operands = 0 : i64, tpu.core_type = #tpu.core_type<tc>, window_params = [{transform_indices = @transform_0, window_bounds = array<i64: 1, 3, 64>}, {transform_indices = @transform_1, window_bounds = array<i64: 1, 64, 3>}, {transform_indices = @transform_2, window_bounds = array<i64: 1, 1, 24>}]} {
    %c0 = arith.constant 0 : index
    %c0_0 = arith.constant 0 : index
    %c0_1 = arith.constant 0 : index
    %0 = vector.load %arg1[%c0, %c0_0, %c0_1] : memref<1x3x64xf32, #tpu.memory_space<vmem>>, vector<1x3x64xf32>
    %1 = vector.shape_cast %0 : vector<1x3x64xf32> to vector<3x64xf32>
    %2 = vector.extract_strided_slice %1 {offsets = [0, 0], sizes = [1, 64], strides = [1, 1]} : vector<3x64xf32> to vector<1x64xf32>
    %3 = vector.extract_strided_slice %1 {offsets = [1, 0], sizes = [1, 64], strides = [1, 1]} : vector<3x64xf32> to vector<1x64xf32>
    %4 = vector.extract_strided_slice %1 {offsets = [2, 0], sizes = [1, 64], strides = [1, 1]} : vector<3x64xf32> to vector<1x64xf32>
    %5 = tpu.iota {dimensions = array<i32: 1>} : vector<1x64xi32>
    %6 = tpu.iota {dimensions = array<i32: 1>} : vector<1x24xi32>
    %c63_i32 = arith.constant 63 : i32
    %7 = vector.broadcast %c63_i32 : i32 to vector<1x64xi32>
    %8 = arith.subi %7, %5 : vector<1x64xi32>
    %c0_i32 = arith.constant 0 : i32
    %9 = vector.broadcast %c0_i32 : i32 to vector<1x24xi32>
    %c0_2 = arith.constant 0 : index
    %c0_3 = arith.constant 0 : index
    %c0_4 = arith.constant 0 : index
    %10 = vector.load %arg3[%c0_2, %c0_3, %c0_4] : memref<1x1x24xi32, #tpu.memory_space<vmem>>, vector<1x1x24xi32>
    %11 = vector.shape_cast %10 : vector<1x1x24xi32> to vector<1x24xi32>
    %12 = vector.shape_cast %9 : vector<1x24xi32> to vector<1x1x24xi32>
    tpu.vector_store %arg3[%c0_2, %c0_3, %c0_4], %12 {strides = array<i32>} : memref<1x1x24xi32, #tpu.memory_space<vmem>>, vector<1x1x24xi32>,
    %cst = arith.constant 1.000000e+10 : f32
    %13 = vector.broadcast %cst : f32 to vector<1x64xf32>
    %c0_i32_5 = arith.constant 0 : i32
    %c0_i32_6 = arith.constant 0 : i32
    %c24_i32 = arith.constant 24 : i32
    %14 = arith.addi %c0_i32_6, %c24_i32 : i32
    %c1_i32 = arith.constant 1 : i32
    %15:2 = scf.for %arg4 = %c0_i32_6 to %14 step %c1_i32 iter_args(%arg5 = %c0_i32_5, %arg6 = %13) -> (i32, vector<1x64xf32>)  : i32 {
      %c0_8 = arith.constant 0 : index
      %c0_9 = arith.constant 0 : index
      %c0_10 = arith.constant 0 : index
      %16 = vector.load %arg3[%c0_8, %c0_9, %c0_10] : memref<1x1x24xi32, #tpu.memory_space<vmem>>, vector<1x1x24xi32>
      %17 = vector.shape_cast %16 : vector<1x1x24xi32> to vector<1x24xi32>
      %18 = vector.broadcast %arg4 : i32 to vector<1x24xi32>
      %19 = arith.cmpi eq, %6, %18 : vector<1x24xi32>
      %c0_i32_11 = arith.constant 0 : i32
      %20 = vector.broadcast %arg5 : i32 to vector<1x24xi32>
      %21 = vector.broadcast %c0_i32_11 : i32 to vector<1x24xi32>
      %22 = arith.select %19, %20, %21 : vector<1x24xi1>, vector<1x24xi32>
      %23 = arith.addi %17, %22 : vector<1x24xi32>
      %c0_12 = arith.constant 0 : index
      %c0_13 = arith.constant 0 : index
      %c0_14 = arith.constant 0 : index
      %24 = vector.load %arg3[%c0_12, %c0_13, %c0_14] : memref<1x1x24xi32, #tpu.memory_space<vmem>>, vector<1x1x24xi32>
      %25 = vector.shape_cast %24 : vector<1x1x24xi32> to vector<1x24xi32>
      %26 = vector.shape_cast %23 : vector<1x24xi32> to vector<1x1x24xi32>
      tpu.vector_store %arg3[%c0_12, %c0_13, %c0_14], %26 {strides = array<i32>} : memref<1x1x24xi32, #tpu.memory_space<vmem>>, vector<1x1x24xi32>,
      %c0_15 = arith.constant 0 : index
      %27 = arith.index_cast %arg5 : i32 to index
      %c0_16 = arith.constant 0 : index
      %28 = vector.load %arg2[%c0_15, %27, %c0_16] : memref<1x64x3xf32, #tpu.memory_space<vmem>>, vector<1x1x3xf32>
      %29 = vector.shape_cast %28 : vector<1x1x3xf32> to vector<1x3xf32>
      %30 = vector.extract_strided_slice %29 {offsets = [0, 0], sizes = [1, 1], strides = [1, 1]} : vector<1x3xf32> to vector<1x1xf32>
      %31 = vector.broadcast %30 : vector<1x1xf32> to vector<1x64xf32>
      %32 = arith.subf %2, %31 : vector<1x64xf32>
      %33 = arith.mulf %32, %32 : vector<1x64xf32>
      %34 = vector.extract_strided_slice %29 {offsets = [0, 1], sizes = [1, 1], strides = [1, 1]} : vector<1x3xf32> to vector<1x1xf32>
      %35 = vector.broadcast %34 : vector<1x1xf32> to vector<1x64xf32>
      %36 = arith.subf %3, %35 : vector<1x64xf32>
      %37 = arith.mulf %36, %36 : vector<1x64xf32>
      %38 = arith.addf %33, %37 : vector<1x64xf32>
      %39 = vector.extract_strided_slice %29 {offsets = [0, 2], sizes = [1, 1], strides = [1, 1]} : vector<1x3xf32> to vector<1x1xf32>
      %40 = vector.broadcast %39 : vector<1x1xf32> to vector<1x64xf32>
      %41 = arith.subf %4, %40 : vector<1x64xf32>
      %42 = arith.mulf %41, %41 : vector<1x64xf32>
      %43 = arith.addf %38, %42 : vector<1x64xf32>
      %44 = arith.minimumf %arg6, %43 : vector<1x64xf32>
      %45 = tpu.bitcast %44 : vector<1x64xf32> -> vector<1x64xi32>
      %c-64_i32 = arith.constant -64 : i32
      %46 = vector.broadcast %c-64_i32 : i32 to vector<1x64xi32>
      %47 = arith.andi %45, %46 : vector<1x64xi32>
      %48 = arith.ori %47, %8 : vector<1x64xi32>
      %49 = vector.shape_cast %48 : vector<1x64xi32> to vector<1x1x64xi32>
      %cst_17 = arith.constant dense<-2147483648> : vector<1xi32>
      %50 = vector.multi_reduction <maxsi>, %49, %cst_17 [1, 2] : vector<1x1x64xi32> to vector<1xi32>
      %51 = vector.shape_cast %50 : vector<1xi32> to vector<1x1x1xi32>
      %52 = vector.extract %51[0, 0, 0] : i32 from vector<1x1x1xi32>
      %c63_i32_18 = arith.constant 63 : i32
      %53 = arith.andi %52, %c63_i32_18 : i32
      %c63_i32_19 = arith.constant 63 : i32
      %54 = arith.subi %c63_i32_19, %53 : i32
      scf.yield %54, %44 : i32, vector<1x64xf32>
    }
    %c24_i32_7 = arith.constant 24 : i32
    return
  }
  func.func @transform_0(%arg0: i32) -> (i32, i32, i32) {
    %c0_i32 = arith.constant 0 : i32
    %c0_i32_0 = arith.constant 0 : i32
    %c0_i32_1 = arith.constant 0 : i32
    return %arg0, %c0_i32, %c0_i32_0 : i32, i32, i32
  }
  func.func @transform_1(%arg0: i32) -> (i32, i32, i32) {
    %c0_i32 = arith.constant 0 : i32
    %c0_i32_0 = arith.constant 0 : i32
    %c0_i32_1 = arith.constant 0 : i32
    return %arg0, %c0_i32, %c0_i32_0 : i32, i32, i32
  }
  func.func @transform_2(%arg0: i32) -> (i32, i32, i32) {
    %c0_i32 = arith.constant 0 : i32
    %c0_i32_0 = arith.constant 0 : i32
    %c0_i32_1 = arith.constant 0 : i32
    return %arg0, %c0_i32, %c0_i32_0 : i32, i32, i32
  }
}

</mosaic_0001>

<bundles_post_ra>
// kernel: tpu_custom_call.1
= control target key start
LH: loop header
LB: loop body
LE: loop exit
PB: predicated region body
PF: predicated region fallthrough
CT: control target
= control target key end

     0   :  { %7 = vsyncpa [#allocation3], 0  ;;  %s656_s0 = inlined_call_operand.vmem [shape: f32[2,3,64], index: 0, kind: input, shape index: {}]   ;;  %s657_s1 = inlined_call_operand.vmem [shape: f32[2,64,3], index: 1, kind: input, shape index: {}]   ;;  %s658_s2 = inlined_call_operand.hbm [shape: s32[2,1,24], index: 2, kind: output, shape index: {}]  }
   0x1   :  { %9 = vsyncpa [#allocation3 + $0x1], 0  ;;  %s523_s9 = smov 0   ;;  %s525_s10 = smov 0  }
   0x2   :  { %s527_s11 = smov 0   ;;  %s529_s12 = smov 0  }
   0x3 LB: > { %s544_s13 = sadd.s32 4294967295, %s490_s12   ;;  %s334_s14 = sadd.s32 4294967294, %s490_s12   ;;  %s490_s12 = sphi %s529_s12, %s664_s12   ;;  %s486_s11 = sphi %s527_s11, %s663_s11   ;;  %s482_s10 = sphi %s525_s10, %s662_s10   ;;  %s478_s9 = sphi %s523_s9, %s661_s9  }
   0x4   : > { %s548_s15 = sadd.s32 1, %s490_s12   ;;  %s74_s16 = sadd.s32 1, %s486_s11 }
   0x5   : > { %s71_s17 = ssub.s32 %s490_s12, %s548_s15  ;;  %p84_p0 = scmp.ne.s32.totalorder %s486_s11, %s482_s10 }
   0x6   : > { %p72_p1 = scmp.eq.s32.totalorder %s71_s17, 0  ;;  %p85_p2 = scmp.eq.s32.totalorder %s544_s13, 1 }
   0x7   : > { %p90_p3 = scmp.ne.s32.totalorder %s482_s10, %s478_s9  ;;  %p91_p4 = scmp.eq.s32.totalorder %s334_s14, 1 }
   0x8   : > { %s559_s18 = scalar_select %p72_p1, %s486_s11, %s74_s16  }
   0x9   : > { %p561_p5 = por %p85_p2, %p84_p0  ;;  %p565_p6 = por %p91_p4, %p90_p3 }
   0xa   : > { %p337_p7 = scmp.ge.s32.totalorder %s490_s12, 1  ;;  %p124_p8 = scmp.lt.s32.totalorder %s490_s12, 3 }
   0xc   : > { %p125_p9 = pnand %p337_p7, %p124_p8 }
   0xd   : > { %s147_s21 = sand.u32 (!%p125_p9), 1, %s482_s10   ;;  %p149_p10 = scmp.lt.s32.totalorder (!%p125_p9), %s544_s13, 1 }
   0xe   : > { %128 = sbr.rel (%p125_p9) target bundleno = 475 (0x1db), region = 28  ;;  %s578_s23 = scalar_lea.vmem (!%p125_p9), [#allocation2], %s147_s21 }
   0xf   : > { %s595_s4 = smov (!%p125_p9), 0   ;;  %s597_s5 = smov (!%p125_p9), 0  }
  0x13   : > { %v159_v0 = vlaneseq  ;;  %vm162_vm0 = vcmask 188416   ;;  %s150_s22 = scalar_select %p149_p10, %s544_s13, 1  ;;  %v504_v2 = vmov 0   ;;  %v593_v5 = vmov 1e+10  }
  0x14   : > { %163 = vst.msk [vmem:[%s578_s23] sm:$0x1] %vm162_vm0, %v504_v2 }
  0x15   : > { %v574_v1 = vand.u32 127, %v159_v0  ;;  %s338_s24 = sshll.u32 %s150_s22, 2  ;;  %s343_s25 = sshll.u32 %s150_s22, 6 }
  0x16   : > { %s152_s28 = scalar_lea.vmem %s656_s0, %s338_s24  ;;  %s589_s3 = scalar_lea.vmem %s657_s1, %s343_s25 }
  0x17   : > { %v161_v3 = vsub.s32 63, %v574_v1  ;;  %v591_v4 = vld [vmem:[%s152_s28] sm:$0x7] }
  0x18 LB: >> { %v505_v6 = vmov 1   ;;  %v506_v7 = vmov 0   ;;  %v173_v9 = vstv %s502_s5  ;;  %s179_s6 = scalar_lea.vmem %s589_s3, %s498_s4  ;;  %v175_v10 = vstv %s498_s4  ;;  %s169_s5 = sadd.s32 1, %s502_s5   ;;  %s502_s5 = sphi %s597_s5, %s169_s5   ;;  %s498_s4 = sphi %s595_s4, %s241_s4   ;;  %v494_v5 = vphi %v593_v5, %v210_v5  }
  0x19   : >> { %413 = vset.pattern.permute.xlu0 %v505_v6  ;;  %415 = vset.pattern.permute.xlu1 %v506_v7  ;;  %vm174_vm1 = vcmp.eq.s32.totalorder %v574_v1, %v173_v9  ;;  %v180_v11 = vld [vmem:[%s179_s6] sm:$0x1]  ;;  %v507_v14 = vmov 2   ;;  %vm214_vm2 = vcmask 516096   ;;  %p166_p11 = scmp.ge.s32.totalorder %s169_s5, 24  }
  0x1a   : >> { %189 = vperm.xlu0 %413, %v180_v11   ;;  %v176_v12 = vsel %vm174_vm1, %v175_v10, 0  ;;  %183 = vperm.xlu1 %415, %v180_v11   ;;  %s251_s17 = scalar_lea.hbm (%p166_p11), %s658_s2, %s544_s13  ;;  %s253_s22 = sshll.u32 (%p166_p11), %s578_s23, 4  ;;  %s254_s22 = int_to_ptr.vmem [resolvable:$true] %s253_s22 }
  0x1b   : >> { %v172_v8 = vld [vmem:[%s578_s23] sm:$0x1]  ;;  %s255_s24 = sshll.u32 (%p166_p11), %s251_s17, 4  ;;  %s243_s25 = scalar_lea.sflag (%p166_p11), [#allocation3], %s147_s21  ;;  %s256_s24 = int_to_ptr.hbm [resolvable:$true] %s255_s24 }
  0x1c   : >> { %v177_v13 = vadd.s32 %v176_v12, %v172_v8  ;;  %s430_s26 = sshra.s32 (%p166_p11), %s256_s24, 4  ;;  %s436_s30 = scalar_lea.hbm (%p166_p11), %s658_s2, 2  ;;  %s431_s26 = int_to_ptr.hbm [resolvable:$true] %s430_s26 }
  0x1d   : > { %s432_s27 = scalar_lea.hbm (%p166_p11), %s431_s26, 1  ;;  %p437_p1 = scmp.lt.s32.totalorder (%p166_p11), %s431_s26, %s658_s2 }
  0x1e   : >> { %178 = vst.msk [vmem:[%s578_s23] sm:$0x1] %vm162_vm0, %v177_v13  ;;  %p433_p12 = scmp.ne.s32.totalorder (%p166_p11), %s431_s26, %s432_s27  ;;  %p438_p2 = scmp.lt.s32.totalorder (%p166_p11), %s436_s30, %s432_s27 }
  0x20   : > { %p434_p13 = pnand (%p166_p11), %p433_p12, %p561_p5  ;;  %p439_p3 = por (%p166_p11), %p438_p2, %p437_p1 }
  0x22   : >> { %414 = vset.pattern.permute.xlu0 %v507_v14  ;;  %p435_p0 = pneg (%p166_p11), %p434_p13 }
  0x23   : >> { %200 = vperm.xlu0 %414, %v180_v11  }
  0x24   : > { %p440_p4 = pnand (%p166_p11), %p439_p3, %p435_p0 }
  0x8c   : >> { %v190_v15 = vpop.permute.xlu0 %189  ;;  %v184_v18 = vpop.permute.xlu1 %183 }
  0x8d   : >> { %v191_v16 = vrot.slane %v190_v15, 7  ;;  %v186_v20 = vsub.f32 %v591_v4, %v184_v18 }
  0x8f   : >> { %v193_v17 = vsub.f32 %v591_v4, %v191_v16  ;;  %v187_v24 = vmul.f32 %v186_v20, %v186_v20 }
  0x91   : >> { %v194_v19 = vmul.f32 %v193_v17, %v193_v17 }
  0x93   : >> { %v196_v23 = vrot.slane %v194_v19, 1 }
  0x95   : >> { %v201_v21 = vpop.permute.xlu0 %200  ;;  %v198_v27 = vadd.f32 %v196_v23, %v187_v24 }
  0x96   : >> { %v202_v22 = vrot.slane %v201_v21, 6 }
  0x98   : >> { %v204_v25 = vsub.f32 %v591_v4, %v202_v22 }
  0x9a   : >> { %v205_v26 = vmul.f32 %v204_v25, %v204_v25 }
  0x9c   : >> { %v207_v28 = vrot.slane %v205_v26, 2 }
  0x9e   : >> { %v209_v29 = vadd.f32 %v207_v28, %v198_v27 }
  0xa0   : >> { %v210_v5 = vmin.f32 %v494_v5, %v209_v29  }
  0xa2   : >> { %v212_v30 = vand.u32 4294967232, %v210_v5 }
  0xa4   : >> { %v213_v31 = vor.u32 %v212_v30, %v161_v3 }
  0xa6   : >> { %v215_v32 = vsel %vm214_vm2, %v213_v31, 2147483648 }
  0xa7   : >> { %v217_v33 = vshra.s32 %v215_v32, 16  ;;  %v216_v35 = vand.u32 65535, %v215_v32 }
  0xa9   : >> { %v219_v34 = vcvt.s32.f32 %v217_v33  ;;  %v218_v37 = vcvt.s32.f32 %v216_v35 }
  0xab   : >> { %220 = vmax.xlane.f32.xlu1 %v219_v34 }
 0x11e   : >> { %v221_v36 = vpop.xlane.xlu1 %220 }
 0x11f   : >> { %vm222_vm3 = vcmp.eq.f32.partialorder %v219_v34, %v221_v36  ;;  %v227_v39 = vcvt.f32.s32 %v221_v36 }
 0x120   : >> { %v223_v38 = vsel %vm222_vm3, %v218_v37, -inf }
 0x121   : >> { %224 = vmax.xlane.f32.xlu2 %v223_v38  ;;  %v228_v41 = vshll.u32 %v227_v39, 16 }
 0x194   : >> { %v225_v40 = vpop.xlane.xlu2 %224 }
 0x195   : >> { %v226_v42 = vcvt.f32.s32 %v225_v40 }
 0x197   : >> { %v229_v43 = vadd.s32 %v228_v41, %v226_v42 }
 0x199   : >> { %v230_v44 = vrot.slane %v229_v43, 4 }
 0x19b   : >> { %vm231_vm4 = vcmp.gt.s32.totalorder %v229_v43, %v230_v44 }
 0x19c   : >> { %v232_v45 = vsel %vm231_vm4, %v229_v43, %v230_v44 }
 0x19d   : >> { %v233_v46 = vrot.slane %v232_v45, 2 }
 0x19f   : >> { %vm234_vm5 = vcmp.gt.s32.totalorder %v232_v45, %v233_v46 }
 0x1a0   : >> { %v235_v47 = vsel %vm234_vm5, %v232_v45, %v233_v46 }
 0x1a1   : >> { %v236_v48 = vrot.slane %v235_v47, 1 }
 0x1a3   : >> { %vm237_vm6 = vcmp.gt.s32.totalorder %v235_v47, %v236_v48 }
 0x1a4   : >> { %v238_v49 = vsel %vm237_vm6, %v235_v47, %v236_v48 }
 0x1a5   : >> { %344 = vpush %v238_v49 }
 0x1d4   : > { %168 = sbr.rel (!%p166_p11) target bundleno = 24 (0x18), region = 74 }
 0x1d6   : >> { %s345_s7 = spop %344 }
 0x1d7   : >> { %s240_s8 = sand.u32 63, %s345_s7 }
 0x1d8   : >> { %s241_s4 = ssub.s32 63, %s240_s8  }
 0x1d9   : > { %443 = shalt.err (!%p440_p4)
}
 0x1da   : > { %346 = dma.vmem_to_hbm [thread:$0]  (%p561_p5), %s254_s22, 16, %s256_s24, %s243_s25  }
 0x1db PF: > { %p352_p7 = scmp.ge.s32.totalorder %s490_s12, 2  ;;  %s267_s13 = sand.u32 1, %s478_s9  }
 0x1dc   : > { %s268_s21 = scalar_lea.sflag [#allocation3], %s267_s13 }
 0x1dd   : > { %p349_p8 = pnand %p352_p7, %p565_p6 }
 0x1df   : > { %p350_p9 = pneg %p349_p8 }
 0x1e1   : > { %473 = dma.done.wait (%p350_p9), %s268_s21, 16  }
 0x1e2   : > { %475 = vsyncadd (%p350_p9), %s268_s21, 4294967280  ;;  %p12_p10 = scmp.ge.s32.totalorder %s548_s15, 4   ;;  %s661_s9 = smov %s482_s10 }
 0x1e3   : > { %s662_s10 = smov %s486_s11  ;;  %s663_s11 = smov %s559_s18 }
 0x1e4   : > { %s664_s12 = smov %s548_s15  ;;  %14 = sbr.rel (!%p12_p10) target bundleno = 3 (0x3), region = 85 }
 0x1e9   :  { %273 = vsyncpa [#allocation3], 1 }
 0x1ea   :  { %275 = vsyncpa [#allocation3 + $0x1], 1 }

</bundles_post_ra>
